<compile_context>
chip_gen: v7x
topology: tpu7x:2x2x1
jax: 0.10.0
libtpu: 0.0.40
codegen_flags: <defaults>
</compile_context>

<pallas_src>
import jax
import jax.numpy as jnp
from jax.experimental import pallas as pl
from jax.experimental.pallas import tpu as pltpu


def _generator_kernel(x_ref, w_ref, b_ref, o_ref):
    # x_ref, o_ref: (1, C, TP) VMEM blocks — channels on sublanes, pixels on lanes.
    # w_ref: (2C, C) fused [W_mark.T ; W_mask.T]   (out_ch, in_ch)
    # b_ref: (2C, 1) fused [b_mark ; b_mask]
    C = x_ref.shape[1]
    x = x_ref[0]                                          # (C, TP) f32
    w = w_ref[...]                                        # (2C, C)
    b = b_ref[...]                                        # (2C, 1)

    if C <= 8:
        # Tiny-K channel mix: unrolled outer-product multiply-adds on the VPU,
        # skipping the MXU entirely (K = C is <4% MXU utilization and its push
        # cadence would rival the per-tile HBM time).  Stays exact f32.
        acc = w[:, 0:1] * x[0:1, :]                       # (2C, TP)
        for c in range(1, C):
            acc = acc + w[:, c:c + 1] * x[c:c + 1, :]
        raw = acc + b
    else:
        # Fused channel-mixing matmul: (2C, C) @ (C, TP) -> (2C, TP).
        raw = jnp.dot(w, x, preferred_element_type=jnp.float32) + b

    # One dense EUP tanh pass over the full fused block, then slice.
    t = jnp.tanh(raw)                                     # (2C, TP)
    mark = t[:C, :] * 0.5 + 0.5                           # (C, TP)
    mask = jnp.tanh(t[C:, :] * 10.0) * 0.5 + 0.5          # (C, TP)

    o_ref[0] = (x + mask * (mark - x)).astype(o_ref.dtype)


def _default_num_tensorcores():
    """Best-effort TensorCore count (v7x has 2 per chip, v5e/v6e have 1)."""
    try:
        kind = jax.devices()[0].device_kind.lower()
    except Exception:
        return 1
    return 2 if "v7" in kind else 1


def _pick_pixel_tile(P, n_batch, num_cores, max_tp=32768):
    """Lane-dense pixel tile: either the full row or a multiple of 128."""
    tp = min(P, max_tp)
    # Only split a single-image workload when there are >= 2 TensorCores to
    # feed; on 1-TC chips splitting just doubles grid-step overhead.
    if num_cores >= 2 and n_batch == 1 and P > 256:
        tp = min(tp, -(-P // num_cores))
    if tp != P and tp % 128 != 0:
        tp = ((tp + 127) // 128) * 128
    return tp


def pack_generator_params(w_mark, b_mark, w_mask, b_mask):
    """Pack the two 1x1-conv sub-generators into fused (2C, C) / (2C, 1) params.

    Call once outside the hot path; reuse the result across forward calls.
    w_*: (C_in, C_out), b_*: (C_out,).
    """
    w_cat = jnp.concatenate([w_mark.T, w_mask.T], axis=0).astype(jnp.float32)   # (2C, C)
    b_cat = jnp.concatenate([b_mark, b_mask], axis=0).reshape(-1, 1).astype(jnp.float32)
    return w_cat, b_cat


def generator_forward(x_nchw, w_packed, b_packed, *, max_tp=32768, num_tensorcores=None):
    """x_nchw: (N, C, H, W) f32.  w_packed: (2C, C).  b_packed: (2C, 1)."""
    N, C, H, W = x_nchw.shape
    P = H * W

    if num_tensorcores is None:
        num_tensorcores = _default_num_tensorcores()

    # Pure reshape — no HBM data movement (stays channel-major).
    x3d = x_nchw.reshape(N, C, P)

    tp = _pick_pixel_tile(P, N, num_tensorcores, max_tp=max_tp)
    grid = (N, pl.cdiv(P, tp))

    out3d = pl.pallas_call(
        _generator_kernel,
        out_shape=jax.ShapeDtypeStruct((N, C, P), x3d.dtype),
        grid_spec=pltpu.PrefetchScalarGridSpec(
            num_scalar_prefetch=0,
            grid=grid,
            in_specs=[
                pl.BlockSpec((1, C, tp), lambda n, p: (n, 0, p)),   # x tile
                pl.BlockSpec((2 * C, C), lambda n, p: (0, 0)),      # fused weights
                pl.BlockSpec((2 * C, 1), lambda n, p: (0, 0)),      # fused biases
            ],
            out_specs=pl.BlockSpec((1, C, tp), lambda n, p: (n, 0, p)),
        ),
        compiler_params=pltpu.CompilerParams(
            dimension_semantics=("parallel", "parallel"),
        ),
    )(x3d, w_packed, b_packed)

    return out3d.reshape(N, C, H, W)


def _reference(x_nchw, w_mark, b_mark, w_mask, b_mask):
    """Pure-JAX reference mirroring the PyTorch semantics (exact f32 math)."""
    N, C, H, W = x_nchw.shape
    x2d = jnp.transpose(x_nchw, (0, 2, 3, 1)).reshape(-1, C)
    hi = jax.lax.Precision.HIGHEST
    mark = jnp.tanh(jnp.dot(x2d, w_mark, precision=hi) + b_mark) / 2 + 0.5
    mask = jnp.tanh(jnp.tanh(jnp.dot(x2d, w_mask, precision=hi) + b_mask) * 10.0) / 2 + 0.5
    out = x2d + mask * (mark - x2d)
    return jnp.transpose(out.reshape(N, H, W, C), (0, 3, 1, 2))


if __name__ == "__main__":
    key = jax.random.PRNGKey(0)
    k_x, k_wm, k_bm, k_wk, k_bk = jax.random.split(key, 5)

    N, C, H, W = 2, 4, 16, 16
    x = jax.random.normal(k_x, (N, C, H, W), dtype=jnp.float32)

    # Deterministic parameter init for the two 1x1-conv sub-generators.
    w_mark = jax.random.normal(k_wm, (C, C), dtype=jnp.float32) * 0.3
    b_mark = jax.random.normal(k_bm, (C,), dtype=jnp.float32) * 0.1
    w_mask = jax.random.normal(k_wk, (C, C), dtype=jnp.float32) * 0.3
    b_mask = jax.random.normal(k_bk, (C,), dtype=jnp.float32) * 0.1

    # Pack the sub-generator parameters once, outside the hot path.
    w_packed, b_packed = pack_generator_params(w_mark, b_mark, w_mask, b_mask)

    out = generator_forward(x, w_packed, b_packed)
    out = jax.block_until_ready(out)

    ref = _reference(x, w_mark, b_mark, w_mask, b_mask)
    assert out.shape == (N, C, H, W)
    assert jnp.allclose(out, ref, atol=1e-5, rtol=1e-5), float(jnp.max(jnp.abs(out - ref)))

    print("KERNEL_OK")
</pallas_src>

<mosaic_0001>
module attributes {stable_mosaic.version = 11 : i64} {
  func.func @_generator_kernel(%arg0: i32, %arg1: i32, %arg2: memref<1x4x256xf32, #tpu.memory_space<vmem>>, %arg3: memref<8x4xf32, #tpu.memory_space<vmem>>, %arg4: memref<8x1xf32, #tpu.memory_space<vmem>>, %arg5: memref<1x4x256xf32, #tpu.memory_space<vmem>>) attributes {dimension_semantics = [#tpu.dimension_semantics<parallel>, #tpu.dimension_semantics<parallel>], iteration_bounds = array<i64: 2, 1>, scalar_prefetch = 0 : i64, scratch_operands = 0 : i64, tpu.core_type = #tpu.core_type<tc>, window_params = [{transform_indices = @transform_0, window_bounds = array<i64: 1, 4, 256>}, {pipeline_mode = #tpu.pipeline_mode<synchronous>, transform_indices = @transform_1, window_bounds = array<i64: 8, 4>}, {pipeline_mode = #tpu.pipeline_mode<synchronous>, transform_indices = @transform_2, window_bounds = array<i64: 8, 1>}, {transform_indices = @transform_3, window_bounds = array<i64: 1, 4, 256>}]} {
    %c0 = arith.constant 0 : index
    %c0_0 = arith.constant 0 : index
    %c0_1 = arith.constant 0 : index
    %0 = vector.load %arg2[%c0, %c0_0, %c0_1] : memref<1x4x256xf32, #tpu.memory_space<vmem>>, vector<1x4x256xf32>
    %1 = vector.shape_cast %0 : vector<1x4x256xf32> to vector<4x256xf32>
    %c0_2 = arith.constant 0 : index
    %c0_3 = arith.constant 0 : index
    %2 = vector.load %arg3[%c0_2, %c0_3] : memref<8x4xf32, #tpu.memory_space<vmem>>, vector<8x4xf32>
    %c0_4 = arith.constant 0 : index
    %c0_5 = arith.constant 0 : index
    %3 = vector.load %arg4[%c0_4, %c0_5] : memref<8x1xf32, #tpu.memory_space<vmem>>, vector<8x1xf32>
    %4 = vector.extract_strided_slice %2 {offsets = [0, 0], sizes = [8, 1], strides = [1, 1]} : vector<8x4xf32> to vector<8x1xf32>
    %5 = vector.extract_strided_slice %1 {offsets = [0, 0], sizes = [1, 256], strides = [1, 1]} : vector<4x256xf32> to vector<1x256xf32>
    %6 = vector.broadcast %4 : vector<8x1xf32> to vector<8x256xf32>
    %7 = vector.broadcast %5 : vector<1x256xf32> to vector<8x256xf32>
    %8 = arith.mulf %6, %7 : vector<8x256xf32>
    %9 = vector.extract_strided_slice %2 {offsets = [0, 1], sizes = [8, 1], strides = [1, 1]} : vector<8x4xf32> to vector<8x1xf32>
    %10 = vector.extract_strided_slice %1 {offsets = [1, 0], sizes = [1, 256], strides = [1, 1]} : vector<4x256xf32> to vector<1x256xf32>
    %11 = vector.broadcast %9 : vector<8x1xf32> to vector<8x256xf32>
    %12 = vector.broadcast %10 : vector<1x256xf32> to vector<8x256xf32>
    %13 = arith.mulf %11, %12 : vector<8x256xf32>
    %14 = arith.addf %8, %13 : vector<8x256xf32>
    %15 = vector.extract_strided_slice %2 {offsets = [0, 2], sizes = [8, 1], strides = [1, 1]} : vector<8x4xf32> to vector<8x1xf32>
    %16 = vector.extract_strided_slice %1 {offsets = [2, 0], sizes = [1, 256], strides = [1, 1]} : vector<4x256xf32> to vector<1x256xf32>
    %17 = vector.broadcast %15 : vector<8x1xf32> to vector<8x256xf32>
    %18 = vector.broadcast %16 : vector<1x256xf32> to vector<8x256xf32>
    %19 = arith.mulf %17, %18 : vector<8x256xf32>
    %20 = arith.addf %14, %19 : vector<8x256xf32>
    %21 = vector.extract_strided_slice %2 {offsets = [0, 3], sizes = [8, 1], strides = [1, 1]} : vector<8x4xf32> to vector<8x1xf32>
    %22 = vector.extract_strided_slice %1 {offsets = [3, 0], sizes = [1, 256], strides = [1, 1]} : vector<4x256xf32> to vector<1x256xf32>
    %23 = vector.broadcast %21 : vector<8x1xf32> to vector<8x256xf32>
    %24 = vector.broadcast %22 : vector<1x256xf32> to vector<8x256xf32>
    %25 = arith.mulf %23, %24 : vector<8x256xf32>
    %26 = arith.addf %20, %25 : vector<8x256xf32>
    %27 = vector.broadcast %3 : vector<8x1xf32> to vector<8x256xf32>
    %28 = arith.addf %26, %27 : vector<8x256xf32>
    %29 = math.tanh %28 : vector<8x256xf32>
    %30 = vector.extract_strided_slice %29 {offsets = [0, 0], sizes = [4, 256], strides = [1, 1]} : vector<8x256xf32> to vector<4x256xf32>
    %cst = arith.constant 5.000000e-01 : f32
    %31 = vector.broadcast %cst : f32 to vector<4x256xf32>
    %32 = arith.mulf %30, %31 : vector<4x256xf32>
    %cst_6 = arith.constant 5.000000e-01 : f32
    %33 = vector.broadcast %cst_6 : f32 to vector<4x256xf32>
    %34 = arith.addf %32, %33 : vector<4x256xf32>
    %35 = vector.extract_strided_slice %29 {offsets = [4, 0], sizes = [4, 256], strides = [1, 1]} : vector<8x256xf32> to vector<4x256xf32>
    %cst_7 = arith.constant 1.000000e+01 : f32
    %36 = vector.broadcast %cst_7 : f32 to vector<4x256xf32>
    %37 = arith.mulf %35, %36 : vector<4x256xf32>
    %38 = math.tanh %37 : vector<4x256xf32>
    %cst_8 = arith.constant 5.000000e-01 : f32
    %39 = vector.broadcast %cst_8 : f32 to vector<4x256xf32>
    %40 = arith.mulf %38, %39 : vector<4x256xf32>
    %cst_9 = arith.constant 5.000000e-01 : f32
    %41 = vector.broadcast %cst_9 : f32 to vector<4x256xf32>
    %42 = arith.addf %40, %41 : vector<4x256xf32>
    %43 = arith.subf %34, %1 : vector<4x256xf32>
    %44 = arith.mulf %42, %43 : vector<4x256xf32>
    %45 = arith.addf %1, %44 : vector<4x256xf32>
    %c0_10 = arith.constant 0 : index
    %c0_11 = arith.constant 0 : index
    %c0_12 = arith.constant 0 : index
    %46 = vector.load %arg5[%c0_10, %c0_11, %c0_12] : memref<1x4x256xf32, #tpu.memory_space<vmem>>, vector<1x4x256xf32>
    %47 = vector.shape_cast %46 : vector<1x4x256xf32> to vector<4x256xf32>
    %48 = vector.shape_cast %45 : vector<4x256xf32> to vector<1x4x256xf32>
    tpu.vector_store %arg5[%c0_10, %c0_11, %c0_12], %48 {strides = array<i32>} : memref<1x4x256xf32, #tpu.memory_space<vmem>>, vector<1x4x256xf32>,
    return
  }
  func.func @transform_0(%arg0: i32, %arg1: i32) -> (i32, i32, i32) {
    %c0_i32 = arith.constant 0 : i32
    %c0_i32_0 = arith.constant 0 : i32
    return %arg0, %c0_i32, %arg1 : i32, i32, i32
  }
  func.func @transform_1(%arg0: i32, %arg1: i32) -> (i32, i32) {
    %c0_i32 = arith.constant 0 : i32
    %c0_i32_0 = arith.constant 0 : i32
    %c0_i32_1 = arith.constant 0 : i32
    return %c0_i32, %c0_i32_0 : i32, i32
  }
  func.func @transform_2(%arg0: i32, %arg1: i32) -> (i32, i32) {
    %c0_i32 = arith.constant 0 : i32
    %c0_i32_0 = arith.constant 0 : i32
    %c0_i32_1 = arith.constant 0 : i32
    return %c0_i32, %c0_i32_0 : i32, i32
  }
  func.func @transform_3(%arg0: i32, %arg1: i32) -> (i32, i32, i32) {
    %c0_i32 = arith.constant 0 : i32
    %c0_i32_0 = arith.constant 0 : i32
    return %arg0, %c0_i32, %arg1 : i32, i32, i32
  }
}

</mosaic_0001>

<bundles_post_ra>
// kernel: tpu_custom_call.1
= control target key start
LH: loop header
LB: loop body
LE: loop exit
PB: predicated region body
PF: predicated region fallthrough
CT: control target
= control target key end

     0   :  { %8 = vsyncpa [#allocation3], 0  ;;  %s765_s0 = inlined_call_operand.vmem [shape: f32[2,4,256], index: 0, kind: input, shape index: {}]   ;;  %s766_s1 = inlined_call_operand.vmem [shape: f32[8,4], index: 1, kind: input, shape index: {}]   ;;  %s767_s2 = inlined_call_operand.vmem [shape: f32[8,1], index: 2, kind: input, shape index: {}]   ;;  %s768_s3 = inlined_call_operand.hbm [shape: f32[2,4,256], index: 3, kind: output, shape index: {}]  }
   0x1   :  { %10 = vsyncpa [#allocation3 + $0x1], 0  ;;  %s633_s12 = smov 0   ;;  %s635_s13 = smov 0  }
   0x2   :  { %s637_s14 = smov 0   ;;  %s639_s15 = smov 0  }
   0x3   :  { %s641_s16 = smov 0   ;;  %s643_s17 = smov 0  }
   0x4 LB: > { %s439_s18 = sadd.s32 4294967295, %s606_s17   ;;  %s440_s19 = sadd.s32 4294967294, %s606_s17   ;;  %s606_s17 = sphi %s643_s17, %s16_s17   ;;  %s602_s16 = sphi %s641_s16, %s775_s16   ;;  %s598_s15 = sphi %s639_s15, %s774_s15   ;;  %s594_s14 = sphi %s637_s14, %s773_s14   ;;  %s590_s13 = sphi %s635_s13, %s772_s13   ;;  %s586_s12 = sphi %s633_s12, %s771_s12  }
   0x5   : > { %s28_s20 = sadd.s32 1, %s602_s16  ;;  %s107_s21 = sadd.s32 1, %s594_s14 }
   0x6   : > { %p30_p0 = scmp.ge.s32.totalorder %s28_s20, 2  ;;  %p117_p1 = scmp.ne.s32.totalorder %s594_s14, %s590_s13 }
   0x7   : > { %p118_p2 = scmp.eq.s32.totalorder %s439_s18, 1  ;;  %p123_p3 = scmp.ne.s32.totalorder %s590_s13, %s586_s12 }
   0x8   : > { %s777_s20 = smov (%p30_p0, %s28_s20), 0  ;;  %p124_p5 = scmp.eq.s32.totalorder %s440_s19, 1 }
   0x9   : > { %p673_p4 = por %p118_p2, %p117_p1  ;;  %s102_s23 = ssub.s32 %s602_s16, %s777_s20 }
   0xa   : > { %p443_p6 = scmp.ge.s32.totalorder %s606_s17, 1  ;;  %p105_p7 = scmp.eq.s32.totalorder %s102_s23, 0 }
   0xb   : > { %p680_p8 = por %p124_p5, %p123_p3  ;;  %p161_p9 = scmp.lt.s32.totalorder %s606_s17, 3 }
   0xc   : > { %s686_s25 = scalar_select %p105_p7, %s594_s14, %s107_s21  }
   0xd   : > { %p162_p10 = pnand %p443_p6, %p161_p9 }
   0xe   : > { %v201_v0 = vld [vmem:[%s766_s1] sm:$0xff] (!%p162_p10)  ;;  %v608_v1 = vmov (!%p162_p10), 0   ;;  %v609_v2 = vmov (!%p162_p10), 2   ;;  %v610_v3 = vmov (!%p162_p10), 1   ;;  %v611_v4 = vmov (!%p162_p10), 3   ;;  %p190_p11 = scmp.lt.s32.totalorder (!%p162_p10), %s598_s15, 1 }
   0xf   : > { %165 = sbr.rel (%p162_p10) target bundleno = 208 (0xd0), region = 32  ;;  %513 = vset.pattern.permute.xlu0 (!%p162_p10), %v608_v1  ;;  %515 = vset.pattern.permute.xlu1 (!%p162_p10), %v609_v2  ;;  %v202_v5 = vld [vmem:[%s767_s2] sm:$0xff] (!%p162_p10)  ;;  %v209_v6 = vlaneseq (!%p162_p10)  ;;  %s186_s8 = sand.u32 (!%p162_p10), 1, %s590_s13  }
  0x10   : > { %205 = vperm.xlu0 (!%p162_p10), %513, %v201_v0   ;;  %256 = vperm.xlu1 (!%p162_p10), %515, %v201_v0   ;;  %s444_s9 = sshll.u32 (!%p162_p10), %s186_s8, 3  ;;  %s453_s10 = sshll.u32 (!%p162_p10), %s598_s15, 7 }
  0x11   : > { %v210_v7 = vshrl.u32 (!%p162_p10), %v209_v6, 7  ;;  %s188_s11 = scalar_lea.vmem (!%p162_p10), [#allocation2], %s444_s9  ;;  %s718_s23 = scalar_lea.hbm (!%p162_p10), %s768_s3, %s453_s10 }
  0x12   : > { %s363_s18 = sshll.u32 (!%p162_p10), %s188_s11, 4  ;;  %s347_s26 = scalar_lea.sflag (!%p162_p10), [#allocation3], %s186_s8  ;;  %s720_s18 = int_to_ptr.vmem [resolvable:$true] %s363_s18 }
  0x13   : > { %v211_v8 = vsub.s32 (!%p162_p10), 0, %v210_v7  ;;  %v215_v9 = vsub.s32 (!%p162_p10), 4, %v210_v7  ;;  %v235_v10 = vsub.s32 (!%p162_p10), 1, %v210_v7  ;;  %v239_v11 = vsub.s32 (!%p162_p10), 5, %v210_v7  ;;  %s528_s27 = scalar_lea.vmem (!%p162_p10), %s720_s18, 128 }
  0x14   : > { %514 = vset.pattern.permute.xlu0 (!%p162_p10), %v610_v3  ;;  %516 = vset.pattern.permute.xlu1 (!%p162_p10), %v611_v4  ;;  %v261_v13 = vsub.s32 (!%p162_p10), 2, %v210_v7  ;;  %v265_v14 = vsub.s32 (!%p162_p10), 6, %v210_v7  ;;  %v287_v15 = vsub.s32 (!%p162_p10), 3, %v210_v7  ;;  %v291_v16 = vsub.s32 (!%p162_p10), 7, %v210_v7  ;;  %p529_p12 = scmp.ne.s32.totalorder (!%p162_p10), %s720_s18, %s528_s27 }
  0x15   : > { %230 = vperm.xlu0 (!%p162_p10), %514, %v201_v0   ;;  %282 = vperm.xlu1 (!%p162_p10), %516, %v201_v0  }
  0x16   : > { %s191_s30 = scalar_select %p190_p11, %s598_s15, 1 }
  0x17   : > { %p530_p13 = pnand %p529_p12, %p673_p4  ;;  %s612_s15 = smov [#allocation2]  }
  0x18   : > { %s452_s4 = sshll.u32 %s191_s30, 3  ;;  %s532_s28 = sshll.u32 %s612_s15, 4  ;;  %s533_s28 = int_to_ptr.vmem [resolvable:$false] %s532_s28 }
  0x19   : > { %517 = vset.pattern.permute.xlu1 %v608_v1  ;;  %518 = vset.pattern.permute.xlu0 %v608_v1  ;;  %s197_s7 = scalar_lea.vmem %s765_s0, %s452_s4  ;;  %p531_p0 = pneg %p530_p13 }
  0x1a   : > { %309 = vperm.xlu1 %517, %v202_v5   ;;  %v699_v12 = vld [vmem:[%s197_s7] sm:$0xff]  ;;  %s534_s29 = scalar_lea.vmem %s533_s28, 256  ;;  %p535_p1 = scmp.lt.s32.totalorder %s720_s18, %s533_s28 }
  0x1b   : > { %v212_v17 = vrot.slane %v699_v12, %v211_v8  ;;  %v216_v18 = vrot.slane %v699_v12, %v215_v9  ;;  %v236_v19 = vrot.slane %v699_v12, %v235_v10  ;;  %v240_v20 = vrot.slane %v699_v12, %v239_v11  ;;  %p536_p2 = scmp.lt.s32.totalorder %s534_s29, %s528_s27 }
  0x1c   : > { %v262_v21 = vrot.slane %v699_v12, %v261_v13  ;;  %v266_v22 = vrot.slane %v699_v12, %v265_v14  ;;  %v288_v25 = vrot.slane %v699_v12, %v287_v15  ;;  %v292_v26 = vrot.slane %v699_v12, %v291_v16 }
  0x1d   : > { %v222_v27 = vrot.slane %v212_v17, %v211_v8  ;;  %v226_v28 = vrot.slane %v216_v18, %v211_v8  ;;  %v246_v29 = vrot.slane %v236_v19, %v235_v10  ;;  %v250_v30 = vrot.slane %v240_v20, %v235_v10  ;;  %p537_p3 = por %p536_p2, %p535_p1 }
  0x1e   : > { %v272_v31 = vrot.slane %v262_v21, %v261_v13  ;;  %v276_v32 = vrot.slane %v266_v22, %v261_v13  ;;  %v298_v33 = vrot.slane %v288_v25, %v287_v15  ;;  %v302_v34 = vrot.slane %v292_v26, %v287_v15 }
  0x1f   : > { %v328_v62 = vcombine.high %v699_v12, %v699_v12  ;;  %p538_p5 = pnand %p537_p3, %p531_p0 }
  0x8f   : > { %v206_v23 = vpop.permute.xlu0 %205  ;;  %v257_v24 = vpop.permute.xlu1 %256 }
  0x90   : > { %v227_v37 = vmul.f32 %v222_v27, %v206_v23  ;;  %v228_v38 = vmul.f32 %v226_v28, %v206_v23  ;;  %v277_v41 = vmul.f32 %v272_v31, %v257_v24  ;;  %v278_v42 = vmul.f32 %v276_v32, %v257_v24 }
  0x94   : > { %v231_v35 = vpop.permute.xlu0 %230  ;;  %v283_v36 = vpop.permute.xlu1 %282 }
  0x95   : > { %v251_v39 = vmul.f32 %v246_v29, %v231_v35  ;;  %v252_v40 = vmul.f32 %v250_v30, %v231_v35  ;;  %v303_v45 = vmul.f32 %v298_v33, %v283_v36  ;;  %v304_v46 = vmul.f32 %v302_v34, %v283_v36 }
  0x97   : > { %v253_v43 = vadd.f32 %v251_v39, %v227_v37  ;;  %v254_v44 = vadd.f32 %v252_v40, %v228_v38 }
  0x99   : > { %v279_v47 = vadd.f32 %v277_v41, %v253_v43  ;;  %v280_v48 = vadd.f32 %v278_v42, %v254_v44  ;;  %v310_v49 = vpop.permute.xlu1 %309 }
  0x9b   : > { %v305_v50 = vadd.f32 %v303_v45, %v279_v47  ;;  %v306_v51 = vadd.f32 %v304_v46, %v280_v48 }
  0x9d   : > { %v312_v52 = vadd.f32 %v310_v49, %v305_v50  ;;  %v313_v53 = vadd.f32 %v310_v49, %v306_v51 }
  0x9f   : > { %520 = vtanh.f32 %v312_v52 }
  0xa0   : > { %522 = vtanh.f32 %v313_v53 }
  0xa9   : > { %v521_v54 = vpop.eup %520 }
  0xaa   : > { %v523_v55 = vpop.eup %522  ;;  %v320_v56 = vmul.f32 10.0, %v521_v54  ;;  %v316_v58 = vmul.f32 0.5, %v521_v54 }
  0xab   : > { %v321_v57 = vmul.f32 10.0, %v523_v55  ;;  %v317_v59 = vmul.f32 0.5, %v523_v55 }
  0xac   : > { %524 = vtanh.f32 %v320_v56  ;;  %v318_v60 = vadd.f32 0.5, %v316_v58 }
  0xad   : > { %526 = vtanh.f32 %v321_v57  ;;  %v319_v61 = vadd.f32 0.5, %v317_v59 }
  0xae   : > { %v330_v63 = vsub.f32 %v318_v60, %v699_v12 }
  0xaf   : > { %v331_v1 = vsub.f32 %v319_v61, %v328_v62 }
  0xb0   : > { %v334_v6 = vrot.slane %v330_v63, 4 }
  0xb1   : > { %v335_v8 = vrot.slane %v331_v1, 4 }
  0xb6   : > { %v525_v0 = vpop.eup %524 }
  0xb7   : > { %v527_v2 = vpop.eup %526  ;;  %v324_v3 = vmul.f32 0.5, %v525_v0 }
  0xb8   : > { %v325_v4 = vmul.f32 0.5, %v527_v2 }
  0xb9   : > { %v326_v5 = vadd.f32 0.5, %v324_v3 }
  0xba   : > { %v327_v7 = vadd.f32 0.5, %v325_v4 }
  0xbb   : > { %v338_v9 = vmul.f32 %v334_v6, %v326_v5 }
  0xbc   : > { %v339_v10 = vmul.f32 %v335_v8, %v327_v7 }
  0xbe   : > { %v342_v11 = vcombine.high %v338_v9, %v339_v10 }
  0xc0   : > { %v344_v13 = vadd.f32 %v342_v11, %v699_v12 }
  0xc2   : > { %345 = vst [vmem:[%s188_s11] sm:$0xff] %v344_v13 }
  0xc3   : > { %541 = shalt.err (!%p538_p5)
}
  0xc4   : > { %s542_s30 = scalar_lea.hbm %s718_s23, 128  ;;  %s546_s6 = scalar_lea.hbm %s768_s3, 256 }
  0xc5   : > { %p543_p6 = scmp.ne.s32.totalorder %s718_s23, %s542_s30  ;;  %p547_p10 = scmp.lt.u32.totalorder %s718_s23, %s768_s3 }
  0xc6   : > { %p548_p11 = scmp.lt.u32.totalorder %s546_s6, %s542_s30  ;;  %p550_p13 = scmp.lt.u32.totalorder %s542_s30, %s718_s23 }
  0xc7   : > { %p544_p7 = pnand %p543_p6, %p673_p4 }
  0xc8   : > { %p549_p12 = por %p548_p11, %p547_p10 }
  0xc9   : > { %p545_p9 = pneg %p544_p7 }
  0xca   : > { %p551_p0 = por %p550_p13, %p549_p12 }
  0xcc   : > { %p552_p1 = pnand %p551_p0, %p545_p9 }
  0xce   : > { %555 = shalt.err (!%p552_p1)
}
  0xcf   : > { %454 = dma.vmem_to_hbm [thread:$0]  (%p673_p4), %s720_s18, 128, %s718_s23, %s347_s26  }
  0xd0 PF: > { %p460_p2 = scmp.ge.s32.totalorder %s606_s17, 2  ;;  %s375_s9 = sand.u32 1, %s586_s12  }
  0xd1   : > { %s376_s10 = scalar_lea.sflag [#allocation3], %s375_s9 }
  0xd2   : > { %p457_p3 = pnand %p460_p2, %p680_p8 }
  0xd4   : > { %581 = dma.done.wait (!%p457_p3), %s376_s10, 128  }
  0xd5   : > { %583 = vsyncadd (!%p457_p3), %s376_s10, 4294967168  ;;  %s16_s17 = sadd.s32 1, %s606_s17   ;;  %s771_s12 = smov %s590_s13 }
  0xd6   : > { %p13_p5 = scmp.ge.s32.totalorder %s16_s17, 4   ;;  %s772_s13 = smov %s594_s14 }
  0xd7   : > { %s773_s14 = smov %s686_s25  ;;  %s774_s15 = smov %s602_s16 }
  0xd8   : > { %s775_s16 = smov %s777_s20  ;;  %15 = sbr.rel (!%p13_p5) target bundleno = 4 (0x4), region = 67 }
  0xdf   :  { %381 = vsyncpa [#allocation3], 1 }
  0xe0   :  { %383 = vsyncpa [#allocation3 + $0x1], 1 }

</bundles_post_ra>
